<compile_context>
chip_gen: v6e
topology: v6e:2x2x1
jax: 0.10.0
libtpu: 0.0.40
codegen_flags: <defaults>
</compile_context>

<pallas_src>
import functools

import jax
import jax.numpy as jnp
from jax.experimental import pallas as pl
from jax.experimental.pallas import tpu as pltpu

_LANE = 128
_SUBLANE = 8
_MAX_BLOCK_ROWS = 4096   # (4096,128) f32 tile = 2 MiB; 2 inputs x 2 bufs = 8 MiB
_VMEM_LIMIT_BYTES = 32 * 1024 * 1024


def _round_up(x, m):
    return (x + m - 1) // m * m


@functools.lru_cache(maxsize=None)
def _num_parallel_cores():
    """2-way 'parallel' split only on multi-TensorCore chips (e.g. v7x)."""
    try:
        info = pltpu.get_tpu_info()
    except Exception:
        return 1
    for attr in ("num_tensorcores", "tensorcores_per_chip", "num_cores",
                 "cores_per_chip", "core_count"):
        val = getattr(info, attr, None)
        if isinstance(val, int) and val in (1, 2):
            return val
    return 1


def _dice_sums_kernel(x_ref, t_ref, prod_ref, sum_ref, *,
                      n_valid, block_rows, blocks_per_core, needs_mask):
    p = pl.program_id(0)       # parallel axis (TensorCore split on multi-TC chips)
    i = pl.program_id(1)       # reduction axis (arbitrary)

    # Output blocks are resident across the reduction axis -> init once per p.
    @pl.when(i == 0)
    def _():
        prod_ref[...] = jnp.zeros_like(prod_ref)
        sum_ref[...] = jnp.zeros_like(sum_ref)

    x = x_ref[...].astype(jnp.float32)
    t = t_ref[...].astype(jnp.float32)
    # sigmoid(x) == 0.5*(tanh(0.5*x)+1): EUP tanh + 2 VALU ops, no divide,
    # mathematically exact so the 1e-5 tolerance vs. the reference holds.
    s = 0.5 * (jnp.tanh(0.5 * x) + 1.0)

    if needs_mask:
        # Flat element index within this block is a compile-time constant vreg;
        # the only runtime work is one compare + two selects per element.
        blk = p * blocks_per_core + i
        flat = (jax.lax.broadcasted_iota(jnp.int32, (block_rows, _LANE), 0) * _LANE
                + jax.lax.broadcasted_iota(jnp.int32, (block_rows, _LANE), 1))
        remaining = n_valid - blk * (block_rows * _LANE)
        valid = flat < remaining
        # Selects (not 0/1 multiplies): garbage (possibly NaN) in partial edge
        # blocks or clamped duplicate blocks is dropped, never propagated.
        s = jnp.where(valid, s, 0.0)
        t = jnp.where(valid, t, 0.0)

    groups = block_rows // _SUBLANE
    # Vector (vreg-shaped) accumulation: pure VALU adds into the resident
    # (8,128) output blocks; the tiny final reduction happens in the wrapper.
    prod_ref[...] += jnp.sum((s * t).reshape(groups, _SUBLANE, _LANE), axis=0)
    sum_ref[...] += jnp.sum((s + t).reshape(groups, _SUBLANE, _LANE), axis=0)


def dice_loss(inputs, targets, smooth=1.0):
    """Pallas implementation of DiceLoss.forward.

    inputs, targets: arrays of identical shape (e.g. NCHW logits / binary
    masks).  They may be passed in narrow dtypes (bf16 logits, int8/bool
    targets); the f32 cast happens inside the kernel in VMEM.
    Returns float32 scalar: 1 - (2*I + smooth) / (sum_sig + sum_tgt + smooth).
    """
    x = jnp.ravel(inputs)
    t = jnp.ravel(targets)
    n = x.shape[0]

    num_parallel = _num_parallel_cores()

    rows = n // _LANE            # 128-aligned prefix handled by the kernel
    n_main = rows * _LANE

    intersection = jnp.float32(0.0)
    total = jnp.float32(0.0)

    if rows > 0:
        # In the common aligned case this reshape is layout-trivial (no pad /
        # full-array copy); only a ragged tail causes a prefix slice.
        x2 = (x if n_main == n else x[:n_main]).reshape(rows, _LANE)
        t2 = (t if n_main == n else t[:n_main]).reshape(rows, _LANE)

        # Split rows across parallel cores even for small inputs, then cap the
        # block at _MAX_BLOCK_ROWS for VMEM.
        block_rows = min(_MAX_BLOCK_ROWS,
                         _round_up(pl.cdiv(rows, num_parallel), _SUBLANE))
        nblocks = pl.cdiv(rows, block_rows)
        bpc = pl.cdiv(nblocks, num_parallel)   # blocks per parallel slice

        # Mask is needed whenever a partial last block exists or the parallel
        # split produces clamped duplicate blocks.  (Keep this coupled to the
        # jnp.minimum clamp in in_idx: duplicates are only safe because they
        # are fully masked.)
        needs_mask = (rows % block_rows != 0) or (nblocks % num_parallel != 0)

        def in_idx(p, i):
            # Clamp so a rounded-up grid never reads past the array; the
            # duplicate block is zeroed by the in-kernel mask.
            return (jnp.minimum(p * bpc + i, nblocks - 1), 0)

        kernel = functools.partial(
            _dice_sums_kernel,
            n_valid=n_main,
            block_rows=block_rows,
            blocks_per_core=bpc,
            needs_mask=needs_mask,
        )

        out_prod, out_sum = pl.pallas_call(
            kernel,
            out_shape=(
                jax.ShapeDtypeStruct((num_parallel * _SUBLANE, _LANE), jnp.float32),
                jax.ShapeDtypeStruct((num_parallel * _SUBLANE, _LANE), jnp.float32),
            ),
            grid_spec=pltpu.PrefetchScalarGridSpec(
                num_scalar_prefetch=0,
                grid=(num_parallel, bpc),
                in_specs=[
                    pl.BlockSpec((block_rows, _LANE), in_idx),
                    pl.BlockSpec((block_rows, _LANE), in_idx),
                ],
                out_specs=[
                    pl.BlockSpec((_SUBLANE, _LANE), lambda p, i: (p, 0)),
                    pl.BlockSpec((_SUBLANE, _LANE), lambda p, i: (p, 0)),
                ],
            ),
            compiler_params=pltpu.CompilerParams(
                dimension_semantics=("parallel", "arbitrary"),
                vmem_limit_bytes=_VMEM_LIMIT_BYTES),
        )(x2, t2)

        # Tiny final combine (O(2*num_parallel*8*128)) in plain JAX.
        intersection = jnp.sum(out_prod)
        total = jnp.sum(out_sum)

    if n_main != n:
        # <128-element ragged tail: tiny plain-JAX partial sums, no full pad.
        tail_s = jax.nn.sigmoid(x[n_main:].astype(jnp.float32))
        tail_t = t[n_main:].astype(jnp.float32)
        intersection = intersection + jnp.sum(tail_s * tail_t)
        total = total + jnp.sum(tail_s) + jnp.sum(tail_t)

    smooth = jnp.float32(smooth)
    dice = (2.0 * intersection + smooth) / (total + smooth)
    return (1.0 - dice).astype(jnp.float32)


def _dice_loss_ref(inputs, targets, smooth=1.0):
    s = jax.nn.sigmoid(inputs.astype(jnp.float32)).ravel()
    t = targets.astype(jnp.float32).ravel()
    inter = jnp.sum(s * t)
    dice = (2.0 * inter + smooth) / (jnp.sum(s) + jnp.sum(t) + smooth)
    return 1.0 - dice


if __name__ == "__main__":
    key = jax.random.PRNGKey(0)
    k1, k2, k3, k4 = jax.random.split(key, 4)

    # Primary shape implied by the UNet training loop: NCHW logits + binary masks.
    x = jax.random.normal(k1, (2, 4, 16, 16), dtype=jnp.float32)
    tg = (jax.random.uniform(k2, (2, 4, 16, 16)) > 0.5).astype(jnp.float32)

    loss = jax.block_until_ready(dice_loss(x, tg, smooth=1.0))
    ref = _dice_loss_ref(x, tg, smooth=1.0)
    assert jnp.allclose(loss, ref, rtol=1e-5, atol=1e-5), (loss, ref)

    # Ragged (non-multiple-of-128) shape exercises the masked partial block
    # and the plain-JAX tail path.
    xr = jax.random.normal(k3, (3, 5, 7, 9), dtype=jnp.float32)
    tr = (jax.random.uniform(k4, (3, 5, 7, 9)) > 0.5).astype(jnp.float32)
    loss_r = jax.block_until_ready(dice_loss(xr, tr, smooth=1.0))
    ref_r = _dice_loss_ref(xr, tr, smooth=1.0)
    assert jnp.allclose(loss_r, ref_r, rtol=1e-5, atol=1e-5), (loss_r, ref_r)

    print("KERNEL_OK")
</pallas_src>

<mosaic_0001>
module attributes {stable_mosaic.version = 11 : i64} {
  func.func @_dice_sums_kernel(%arg0: i32, %arg1: i32, %arg2: memref<16x128xf32, #tpu.memory_space<vmem>>, %arg3: memref<16x128xf32, #tpu.memory_space<vmem>>, %arg4: memref<8x128xf32, #tpu.memory_space<vmem>>, %arg5: memref<8x128xf32, #tpu.memory_space<vmem>>) attributes {dimension_semantics = [#tpu.dimension_semantics<parallel>, #tpu.dimension_semantics<arbitrary>], iteration_bounds = array<i64: 1, 1>, scalar_prefetch = 0 : i64, scratch_operands = 0 : i64, tpu.core_type = #tpu.core_type<tc>, window_params = [{transform_indices = @transform_0, window_bounds = array<i64: 16, 128>}, {transform_indices = @transform_1, window_bounds = array<i64: 16, 128>}, {transform_indices = @transform_2, window_bounds = array<i64: 8, 128>}, {transform_indices = @transform_3, window_bounds = array<i64: 8, 128>}]} {
    %c0_i32 = arith.constant 0 : i32
    %0 = arith.cmpi eq, %arg1, %c0_i32 : i32
    %1 = arith.extui %0 : i1 to i32
    %c0_i32_0 = arith.constant 0 : i32
    %2 = arith.cmpi ne, %1, %c0_i32_0 : i32
    scf.if %2 {
      %cst_16 = arith.constant 0.000000e+00 : f32
      %24 = vector.broadcast %cst_16 : f32 to vector<8x128xf32>
      %c0_17 = arith.constant 0 : index
      %c0_18 = arith.constant 0 : index
      %25 = vector.load %arg4[%c0_17, %c0_18] : memref<8x128xf32, #tpu.memory_space<vmem>>, vector<8x128xf32>
      tpu.vector_store %arg4[%c0_17, %c0_18], %24 {strides = array<i32>} : memref<8x128xf32, #tpu.memory_space<vmem>>, vector<8x128xf32>,
      %cst_19 = arith.constant 0.000000e+00 : f32
      %26 = vector.broadcast %cst_19 : f32 to vector<8x128xf32>
      %c0_20 = arith.constant 0 : index
      %c0_21 = arith.constant 0 : index
      %27 = vector.load %arg5[%c0_20, %c0_21] : memref<8x128xf32, #tpu.memory_space<vmem>>, vector<8x128xf32>
      tpu.vector_store %arg5[%c0_20, %c0_21], %26 {strides = array<i32>} : memref<8x128xf32, #tpu.memory_space<vmem>>, vector<8x128xf32>,
    } else {
    }
    %c0 = arith.constant 0 : index
    %c0_1 = arith.constant 0 : index
    %3 = vector.load %arg2[%c0, %c0_1] : memref<16x128xf32, #tpu.memory_space<vmem>>, vector<16x128xf32>
    %c0_2 = arith.constant 0 : index
    %c0_3 = arith.constant 0 : index
    %4 = vector.load %arg3[%c0_2, %c0_3] : memref<16x128xf32, #tpu.memory_space<vmem>>, vector<16x128xf32>
    %cst = arith.constant 5.000000e-01 : f32
    %5 = vector.broadcast %cst : f32 to vector<16x128xf32>
    %6 = arith.mulf %5, %3 : vector<16x128xf32>
    %7 = math.tanh %6 : vector<16x128xf32>
    %cst_4 = arith.constant 1.000000e+00 : f32
    %8 = vector.broadcast %cst_4 : f32 to vector<16x128xf32>
    %9 = arith.addf %7, %8 : vector<16x128xf32>
    %cst_5 = arith.constant 5.000000e-01 : f32
    %10 = vector.broadcast %cst_5 : f32 to vector<16x128xf32>
    %11 = arith.mulf %10, %9 : vector<16x128xf32>
    %c0_6 = arith.constant 0 : index
    %c0_7 = arith.constant 0 : index
    %12 = vector.load %arg4[%c0_6, %c0_7] : memref<8x128xf32, #tpu.memory_space<vmem>>, vector<8x128xf32>
    %13 = arith.mulf %11, %4 : vector<16x128xf32>
    %14 = vector.shape_cast %13 : vector<16x128xf32> to vector<2x8x128xf32>
    %cst_8 = arith.constant dense<0.000000e+00> : vector<8x128xf32>
    %15 = vector.multi_reduction <add>, %14, %cst_8 [0] : vector<2x8x128xf32> to vector<8x128xf32>
    %16 = arith.addf %12, %15 : vector<8x128xf32>
    %c0_9 = arith.constant 0 : index
    %c0_10 = arith.constant 0 : index
    %17 = vector.load %arg4[%c0_9, %c0_10] : memref<8x128xf32, #tpu.memory_space<vmem>>, vector<8x128xf32>
    tpu.vector_store %arg4[%c0_9, %c0_10], %16 {strides = array<i32>} : memref<8x128xf32, #tpu.memory_space<vmem>>, vector<8x128xf32>,
    %c0_11 = arith.constant 0 : index
    %c0_12 = arith.constant 0 : index
    %18 = vector.load %arg5[%c0_11, %c0_12] : memref<8x128xf32, #tpu.memory_space<vmem>>, vector<8x128xf32>
    %19 = arith.addf %11, %4 : vector<16x128xf32>
    %20 = vector.shape_cast %19 : vector<16x128xf32> to vector<2x8x128xf32>
    %cst_13 = arith.constant dense<0.000000e+00> : vector<8x128xf32>
    %21 = vector.multi_reduction <add>, %20, %cst_13 [0] : vector<2x8x128xf32> to vector<8x128xf32>
    %22 = arith.addf %18, %21 : vector<8x128xf32>
    %c0_14 = arith.constant 0 : index
    %c0_15 = arith.constant 0 : index
    %23 = vector.load %arg5[%c0_14, %c0_15] : memref<8x128xf32, #tpu.memory_space<vmem>>, vector<8x128xf32>
    tpu.vector_store %arg5[%c0_14, %c0_15], %22 {strides = array<i32>} : memref<8x128xf32, #tpu.memory_space<vmem>>, vector<8x128xf32>,
    return
  }
  func.func @transform_0(%arg0: i32, %arg1: i32) -> (i32, i32) {
    %c1_i32 = arith.constant 1 : i32
    %0 = arith.muli %arg0, %c1_i32 : i32
    %1 = arith.addi %0, %arg1 : i32
    %c0_i32 = arith.constant 0 : i32
    %2 = arith.minsi %1, %c0_i32 : i32
    %c0_i32_0 = arith.constant 0 : i32
    %c0_i32_1 = arith.constant 0 : i32
    return %2, %c0_i32_0 : i32, i32
  }
  func.func @transform_1(%arg0: i32, %arg1: i32) -> (i32, i32) {
    %c1_i32 = arith.constant 1 : i32
    %0 = arith.muli %arg0, %c1_i32 : i32
    %1 = arith.addi %0, %arg1 : i32
    %c0_i32 = arith.constant 0 : i32
    %2 = arith.minsi %1, %c0_i32 : i32
    %c0_i32_0 = arith.constant 0 : i32
    %c0_i32_1 = arith.constant 0 : i32
    return %2, %c0_i32_0 : i32, i32
  }
  func.func @transform_2(%arg0: i32, %arg1: i32) -> (i32, i32) {
    %c0_i32 = arith.constant 0 : i32
    %c0_i32_0 = arith.constant 0 : i32
    return %arg0, %c0_i32 : i32, i32
  }
  func.func @transform_3(%arg0: i32, %arg1: i32) -> (i32, i32) {
    %c0_i32 = arith.constant 0 : i32
    %c0_i32_0 = arith.constant 0 : i32
    return %arg0, %c0_i32 : i32, i32
  }
}

</mosaic_0001>

<bundles_post_ra>
// kernel: tpu_custom_call.1
= control target key start
LH: loop header
LB: loop body
LE: loop exit
PB: predicated region body
PF: predicated region fallthrough
CT: control target
= control target key end

     0   :  { %9 = vsyncpa [#allocation3], 0  ;;  %s264_s0 = inlined_call_operand.hbm [shape: f32[16,128], index: 0, kind: input, shape index: {}]   ;;  %s265_s1 = inlined_call_operand.hbm [shape: f32[16,128], index: 1, kind: input, shape index: {}]   ;;  %s266_s2 = inlined_call_operand.hbm [shape: f32[8,128], index: 2, kind: output, shape index: {0}]   ;;  %s267_s3 = inlined_call_operand.hbm [shape: f32[8,128], index: 3, kind: output, shape index: {1}]  }
   0x1   :  { %10 = vsyncpa [#allocation6], 0 }
   0x2   :  { %11 = vsyncpa [#allocation4], 0 }
   0x3   :  { %12 = vsyncpa [#allocation9], 0  ;;  %s226_s12 = smov [#allocation2]  }
   0x4   :  { %s24_s13 = sshll.u32 %s226_s12, 4  ;;  %s25_s13 = int_to_ptr.vmem [resolvable:$true] %s24_s13 }
   0x5   :  { %s146_s14 = scalar_lea.vmem %s25_s13, 256  ;;  %p151_p1 = scmp.lt.s32.totalorder %s25_s13, %s25_s13 }
   0x6   :  { %p147_p0 = scmp.ne.s32.totalorder %s25_s13, %s146_s14  ;;  %p152_p2 = scmp.lt.s32.totalorder %s146_s14, %s146_s14 }
   0x8   :  { %p153_p3 = por %p152_p2, %p151_p1 }
   0xa   :  { %p154_p4 = pnand %p153_p3, %p147_p0 }
   0xc   :  { %157 = shalt.err (!%p154_p4)
}
   0xd   :  { %s227_s15 = smov 128   ;;  %s228_s16 = smov 8  }
   0xe   :  { %30 = dma.hbm_to_vmem [thread:$0]  %s264_s0, 256, %s25_s13, [#allocation3], %s227_s15, %s227_s15, %s228_s16  }
   0xf   :  { %s229_s19 = smov [#allocation5]  }
  0x10   :  { %s42_s20 = sshll.u32 %s229_s19, 4  ;;  %s43_s20 = int_to_ptr.vmem [resolvable:$true] %s42_s20 }
  0x11   :  { %s166_s21 = scalar_lea.vmem %s43_s20, 256  ;;  %p171_p6 = scmp.lt.s32.totalorder %s43_s20, %s43_s20 }
  0x12   :  { %p167_p5 = scmp.ne.s32.totalorder %s43_s20, %s166_s21  ;;  %p172_p7 = scmp.lt.s32.totalorder %s166_s21, %s166_s21 }
  0x14   :  { %p173_p8 = por %p172_p7, %p171_p6 }
  0x16   :  { %p174_p9 = pnand %p173_p8, %p167_p5 }
  0x18   :  { %177 = shalt.err (!%p174_p9)
}
  0x19   :  { %48 = dma.hbm_to_vmem [thread:$0]  %s265_s1, 256, %s43_s20, [#allocation6], %s227_s15, %s227_s15, %s228_s16  }
  0x1a   :  { %218 = dma.done.wait [#allocation3], 256  }
  0x1b   :  { %219 = vsyncadd [#allocation3], 4294967040 }
  0x1c   :  { %220 = dma.done.wait [#allocation6], 256  }
  0x1d   :  { %221 = vsyncadd [#allocation6], 4294967040  ;;  %v69_v0 = vld [vmem:[#allocation2] sm:$0xff]  ;;  %v70_v1 = vld [vmem:[#allocation2 + $0x8] sm:$0xff]  ;;  %s230_s0 = smov [#allocation7]   ;;  %s231_s24 = smov [#allocation8]  }
  0x1e   :  { %v73_v2 = vmul.f32 0.5, %v69_v0  ;;  %v74_v3 = vmul.f32 0.5, %v70_v1  ;;  %v71_v7 = vld [vmem:[#allocation5] sm:$0xff]  ;;  %v72_v9 = vld [vmem:[#allocation5 + $0x8] sm:$0xff]  ;;  %s99_s1 = sshll.u32 %s230_s0, 4  ;;  %s109_s25 = sshll.u32 %s231_s24, 4  ;;  %s100_s1 = int_to_ptr.vmem [resolvable:$true] %s99_s1  ;;  %s110_s25 = int_to_ptr.vmem [resolvable:$true] %s109_s25 }
  0x1f   :  { %s178_s26 = scalar_lea.vmem %s100_s1, 128  ;;  %p183_p11 = scmp.lt.s32.totalorder %s100_s1, %s100_s1 }
  0x20   :  { %134 = vtanh.f32 %v73_v2  ;;  %p179_p10 = scmp.ne.s32.totalorder %s100_s1, %s178_s26  ;;  %p184_p12 = scmp.lt.s32.totalorder %s178_s26, %s178_s26 }
  0x21   :  { %136 = vtanh.f32 %v74_v3 }
  0x22   :  { %p185_p13 = por %p184_p12, %p183_p11 }
  0x24   :  { %p186_p0 = pnand %p185_p13, %p179_p10 }
  0x2d   :  { %v135_v4 = vpop.eup %134 }
  0x2e   :  { %v137_v5 = vpop.eup %136  ;;  %v77_v6 = vadd.f32 1.0, %v135_v4 }
  0x2f   :  { %v78_v8 = vadd.f32 1.0, %v137_v5 }
  0x30   :  { %v79_v10 = vmul.f32 0.5, %v77_v6 }
  0x31   :  { %v80_v11 = vmul.f32 0.5, %v78_v8 }
  0x32   :  { %v82_v12 = vmul.f32 %v79_v10, %v71_v7  ;;  %v88_v13 = vadd.f32 %v79_v10, %v71_v7 }
  0x33   :  { %v83_v14 = vmul.f32 %v80_v11, %v72_v9  ;;  %v89_v15 = vadd.f32 %v80_v11, %v72_v9 }
  0x35   :  { %v84_v16 = vadd.f32 %v83_v14, %v82_v12  ;;  %v90_v17 = vadd.f32 %v89_v15, %v88_v13 }
  0x37   :  { %86 = vst [vmem:[#allocation7] sm:$0xff] %v84_v16  ;;  %92 = vst [vmem:[#allocation8] sm:$0xff] %v90_v17 }
  0x38   :  { %189 = shalt.err (!%p186_p0)
}
  0x39   :  { %102 = dma.vmem_to_hbm [thread:$0]  %s100_s1, 128, %s266_s2, [#allocation4]  }
  0x3a   :  { %s198_s29 = scalar_lea.vmem %s110_s25, 128  ;;  %p203_p2 = scmp.lt.s32.totalorder %s110_s25, %s110_s25 }
  0x3b   :  { %p199_p1 = scmp.ne.s32.totalorder %s110_s25, %s198_s29  ;;  %p204_p3 = scmp.lt.s32.totalorder %s198_s29, %s198_s29 }
  0x3d   :  { %p205_p4 = por %p204_p3, %p203_p2 }
  0x3f   :  { %p206_p5 = pnand %p205_p4, %p199_p1 }
  0x41   :  { %209 = shalt.err (!%p206_p5)
}
  0x42   :  { %112 = dma.vmem_to_hbm [thread:$0]  %s110_s25, 128, %s267_s3, [#allocation9]  }
  0x43   :  { %222 = dma.done.wait [#allocation4], 128  }
  0x44   :  { %223 = vsyncadd [#allocation4], 4294967168 }
  0x45   :  { %224 = dma.done.wait [#allocation9], 128  }
  0x46   :  { %225 = vsyncadd [#allocation9], 4294967168 }
  0x47   :  { %119 = vsyncpa [#allocation3], 1 }
  0x48   :  { %120 = vsyncpa [#allocation6], 1 }
  0x49   :  { %121 = vsyncpa [#allocation4], 1 }
  0x4a   :  { %122 = vsyncpa [#allocation9], 1 }

</bundles_post_ra>
